<compile_context>
chip_gen: v5e
topology: v5e:2x2
jax: 0.10.0
libtpu: 0.0.40
codegen_flags: <defaults>
</compile_context>

<pallas_src>
import jax
import jax.numpy as jnp
from jax.experimental import pallas as pl
from jax.experimental.pallas import tpu as pltpu


def _round_up(x, m):
    return ((x + m - 1) // m) * m


def _mlp_kernel(x_ref, w1_ref, b1_ref, w2_ref, b2_ref, w3_ref, b3_ref, o_ref):
    x = x_ref[...]                              # (TB, n_states)  fp32
    tb = x.shape[0]
    n_states, hidden = w1_ref.shape

    # ---- Layer 1 on the VPU: K = n_states is tiny, so an MXU matmul would be
    # K-padded to the full contraction depth for almost no math.  Do n_states
    # broadcast-FMAs over already-resident vregs instead (static unroll).
    h1 = jnp.broadcast_to(b1_ref[...], (tb, hidden))
    for i in range(n_states):
        h1 = h1 + x[:, i:i + 1] * w1_ref[i:i + 1, :]
    h1 = jnp.maximum(h1, 0.0)                   # ReLU, fp32

    # ---- Layer 2: bf16 MXU matmul, fp32 accumulate, fp32 bias + ReLU.
    h2 = jnp.dot(h1.astype(w2_ref.dtype), w2_ref[...],
                 preferred_element_type=jnp.float32) + b2_ref[...]
    h2 = jnp.maximum(h2, 0.0)

    # ---- Layer 3: lane-dense (padded-to-128) output -> unmasked full-lane vst.
    o_ref[...] = (jnp.dot(h2.astype(w3_ref.dtype), w3_ref[...],
                          preferred_element_type=jnp.float32)
                  + b3_ref[...]).astype(o_ref.dtype)


def policy_net_forward(x, params, *, tile_b=256, weight_dtype=jnp.bfloat16):
    """Fused PolicyNet forward on TPU via Pallas.

    x: (batch, n_states) float32
    params: dict with w1 (n_states,256), b1 (1,256), w2 (256,256), b2 (1,256),
            w3 (256,n_actions), b3 (1,n_actions)  -- fp32 master copies.
    """
    batch, n_states = x.shape
    hidden = params["w1"].shape[1]
    n_actions = params["w3"].shape[1]

    # --- Pack params: lane-dense output padding + bf16 storage for the two
    #     large matrices.  (In a real deployment, pack once and reuse.)
    n_out_p = _round_up(n_actions, 128)
    w1 = params["w1"].astype(jnp.float32)
    b1 = params["b1"].astype(jnp.float32)
    w2 = params["w2"].astype(weight_dtype)
    b2 = params["b2"].astype(jnp.float32)
    w3 = jnp.pad(params["w3"], ((0, 0), (0, n_out_p - n_actions))).astype(weight_dtype)
    b3 = jnp.pad(params["b3"], ((0, 0), (0, n_out_p - n_actions))).astype(jnp.float32)

    # --- Batch tiling: stream TILE_B-row tiles; pad the batch up to a multiple.
    tb = min(tile_b, _round_up(batch, 8))
    padded_batch = _round_up(batch, tb)
    x_p = jnp.pad(x.astype(jnp.float32), ((0, padded_batch - batch), (0, 0)))

    grid = (padded_batch // tb,)
    const = lambda i: (0, 0)        # weights/biases: same block every grid step

    out = pl.pallas_call(
        _mlp_kernel,
        out_shape=jax.ShapeDtypeStruct((padded_batch, n_out_p), jnp.float32),
        grid=grid,
        in_specs=[
            pl.BlockSpec((tb, n_states), lambda i: (i, 0)),   # x tile
            pl.BlockSpec((n_states, hidden), const),          # w1 (fp32, tiny)
            pl.BlockSpec((1, hidden), const),                 # b1
            pl.BlockSpec((hidden, hidden), const),            # w2 (bf16)
            pl.BlockSpec((1, hidden), const),                 # b2
            pl.BlockSpec((hidden, n_out_p), const),           # w3 padded (bf16)
            pl.BlockSpec((1, n_out_p), const),                # b3 padded
        ],
        out_specs=pl.BlockSpec((tb, n_out_p), lambda i: (i, 0)),
        compiler_params=pltpu.CompilerParams(
            dimension_semantics=("parallel",),      # megacore split on v7x
            vmem_limit_bytes=32 * 1024 * 1024,      # explicit, with headroom vs v7x 64 MiB
        ),
    )(x_p, w1, b1, w2, b2, w3, b3)

    return out[:batch, :n_actions]


def init_policy_net_params(key, n_states, n_actions, hidden=256):
    """PyTorch nn.Linear-style init (uniform +/- 1/sqrt(fan_in)); weights stored
    transposed relative to PyTorch: (in_features, out_features)."""
    k1, k2, k3, k4, k5, k6 = jax.random.split(key, 6)

    def _uniform(k, shape, fan_in):
        bound = 1.0 / jnp.sqrt(float(fan_in))
        return jax.random.uniform(k, shape, jnp.float32, -bound, bound)

    return {
        "w1": _uniform(k1, (n_states, hidden), n_states),
        "b1": _uniform(k2, (1, hidden), n_states),
        "w2": _uniform(k3, (hidden, hidden), hidden),
        "b2": _uniform(k4, (1, hidden), hidden),
        "w3": _uniform(k5, (hidden, n_actions), hidden),
        "b3": _uniform(k6, (1, n_actions), hidden),
    }


def _reference_forward(x, params, weight_dtype=jnp.bfloat16):
    """fp32 reference using the same bf16-stored weights (highest-precision matmuls)."""
    hi = jax.lax.Precision.HIGHEST
    w1 = params["w1"].astype(jnp.float32)
    w2 = params["w2"].astype(weight_dtype).astype(jnp.float32)
    w3 = params["w3"].astype(weight_dtype).astype(jnp.float32)
    h1 = jnp.maximum(x @ w1 + params["b1"], 0.0)
    h2 = jnp.maximum(jnp.dot(h1, w2, precision=hi) + params["b2"], 0.0)
    return jnp.dot(h2, w3, precision=hi) + params["b3"]


if __name__ == "__main__":
    n_states, n_actions = 4, 2

    key = jax.random.PRNGKey(0)
    key_x, key_x2, key_p = jax.random.split(key, 3)
    params = init_policy_net_params(key_p, n_states, n_actions)

    # Small single-tile case (grid = (1,)).
    x = jax.random.normal(key_x, (8, n_states), dtype=jnp.float32)
    out = policy_net_forward(x, params)
    jax.block_until_ready(out)
    ref = _reference_forward(x, params)
    assert out.shape == (8, n_actions), out.shape
    assert jnp.allclose(out, ref, atol=2e-2, rtol=2e-2), "mismatch vs reference (batch=8)"

    # Multi-tile case exercising the batch grid + padding (grid = (2,)).
    x2 = jax.random.normal(key_x2, (300, n_states), dtype=jnp.float32)
    out2 = policy_net_forward(x2, params)
    jax.block_until_ready(out2)
    ref2 = _reference_forward(x2, params)
    assert out2.shape == (300, n_actions), out2.shape
    assert jnp.allclose(out2, ref2, atol=2e-2, rtol=2e-2), "mismatch vs reference (batch=300)"

    print("KERNEL_OK")
</pallas_src>

<mosaic_0001>
module attributes {stable_mosaic.version = 11 : i64} {
  func.func @_mlp_kernel(%arg0: i32, %arg1: memref<8x4xf32, #tpu.memory_space<vmem>>, %arg2: memref<4x256xf32, #tpu.memory_space<vmem>>, %arg3: memref<1x256xf32, #tpu.memory_space<vmem>>, %arg4: memref<256x256xbf16, #tpu.memory_space<vmem>>, %arg5: memref<1x256xf32, #tpu.memory_space<vmem>>, %arg6: memref<256x128xbf16, #tpu.memory_space<vmem>>, %arg7: memref<1x128xf32, #tpu.memory_space<vmem>>, %arg8: memref<8x128xf32, #tpu.memory_space<vmem>>) attributes {dimension_semantics = [#tpu.dimension_semantics<parallel>], iteration_bounds = array<i64: 1>, scalar_prefetch = 0 : i64, scratch_operands = 0 : i64, tpu.core_type = #tpu.core_type<tc>, window_params = [{transform_indices = @transform_0, window_bounds = array<i64: 8, 4>}, {pipeline_mode = #tpu.pipeline_mode<synchronous>, transform_indices = @transform_1, window_bounds = array<i64: 4, 256>}, {pipeline_mode = #tpu.pipeline_mode<synchronous>, transform_indices = @transform_2, window_bounds = array<i64: 1, 256>}, {pipeline_mode = #tpu.pipeline_mode<synchronous>, transform_indices = @transform_3, window_bounds = array<i64: 256, 256>}, {pipeline_mode = #tpu.pipeline_mode<synchronous>, transform_indices = @transform_4, window_bounds = array<i64: 1, 256>}, {pipeline_mode = #tpu.pipeline_mode<synchronous>, transform_indices = @transform_5, window_bounds = array<i64: 256, 128>}, {pipeline_mode = #tpu.pipeline_mode<synchronous>, transform_indices = @transform_6, window_bounds = array<i64: 1, 128>}, {transform_indices = @transform_7, window_bounds = array<i64: 8, 128>}]} {
    %c0 = arith.constant 0 : index
    %c0_0 = arith.constant 0 : index
    %0 = vector.load %arg1[%c0, %c0_0] : memref<8x4xf32, #tpu.memory_space<vmem>>, vector<8x4xf32>
    %c0_1 = arith.constant 0 : index
    %c0_2 = arith.constant 0 : index
    %1 = vector.load %arg3[%c0_1, %c0_2] : memref<1x256xf32, #tpu.memory_space<vmem>>, vector<1x256xf32>
    %2 = vector.shape_cast %1 : vector<1x256xf32> to vector<1x256xf32>
    %3 = vector.broadcast %2 : vector<1x256xf32> to vector<8x256xf32>
    %4 = vector.extract_strided_slice %0 {offsets = [0, 0], sizes = [8, 1], strides = [1, 1]} : vector<8x4xf32> to vector<8x1xf32>
    %c0_3 = arith.constant 0 : index
    %c0_4 = arith.constant 0 : index
    %5 = vector.load %arg2[%c0_3, %c0_4] : memref<4x256xf32, #tpu.memory_space<vmem>>, vector<1x256xf32>
    %6 = vector.broadcast %4 : vector<8x1xf32> to vector<8x256xf32>
    %7 = vector.broadcast %5 : vector<1x256xf32> to vector<8x256xf32>
    %8 = arith.mulf %6, %7 : vector<8x256xf32>
    %9 = arith.addf %3, %8 : vector<8x256xf32>
    %10 = vector.extract_strided_slice %0 {offsets = [0, 1], sizes = [8, 1], strides = [1, 1]} : vector<8x4xf32> to vector<8x1xf32>
    %c1 = arith.constant 1 : index
    %c0_5 = arith.constant 0 : index
    %11 = vector.load %arg2[%c1, %c0_5] : memref<4x256xf32, #tpu.memory_space<vmem>>, vector<1x256xf32>
    %12 = vector.broadcast %10 : vector<8x1xf32> to vector<8x256xf32>
    %13 = vector.broadcast %11 : vector<1x256xf32> to vector<8x256xf32>
    %14 = arith.mulf %12, %13 : vector<8x256xf32>
    %15 = arith.addf %9, %14 : vector<8x256xf32>
    %16 = vector.extract_strided_slice %0 {offsets = [0, 2], sizes = [8, 1], strides = [1, 1]} : vector<8x4xf32> to vector<8x1xf32>
    %c2 = arith.constant 2 : index
    %c0_6 = arith.constant 0 : index
    %17 = vector.load %arg2[%c2, %c0_6] : memref<4x256xf32, #tpu.memory_space<vmem>>, vector<1x256xf32>
    %18 = vector.broadcast %16 : vector<8x1xf32> to vector<8x256xf32>
    %19 = vector.broadcast %17 : vector<1x256xf32> to vector<8x256xf32>
    %20 = arith.mulf %18, %19 : vector<8x256xf32>
    %21 = arith.addf %15, %20 : vector<8x256xf32>
    %22 = vector.extract_strided_slice %0 {offsets = [0, 3], sizes = [8, 1], strides = [1, 1]} : vector<8x4xf32> to vector<8x1xf32>
    %c3 = arith.constant 3 : index
    %c0_7 = arith.constant 0 : index
    %23 = vector.load %arg2[%c3, %c0_7] : memref<4x256xf32, #tpu.memory_space<vmem>>, vector<1x256xf32>
    %24 = vector.broadcast %22 : vector<8x1xf32> to vector<8x256xf32>
    %25 = vector.broadcast %23 : vector<1x256xf32> to vector<8x256xf32>
    %26 = arith.mulf %24, %25 : vector<8x256xf32>
    %27 = arith.addf %21, %26 : vector<8x256xf32>
    %cst = arith.constant 0.000000e+00 : f32
    %28 = vector.broadcast %cst : f32 to vector<8x256xf32>
    %29 = arith.maximumf %27, %28 : vector<8x256xf32>
    %30 = arith.truncf %29 : vector<8x256xf32> to vector<8x256xbf16>
    %c0_8 = arith.constant 0 : index
    %c0_9 = arith.constant 0 : index
    %31 = vector.load %arg4[%c0_8, %c0_9] : memref<256x256xbf16, #tpu.memory_space<vmem>>, vector<256x256xbf16>
    %cst_10 = arith.constant dense<0.000000e+00> : vector<8x256xf32>
    %32 = tpu.matmul %30, %31, %cst_10 {dimension_numbers = #tpu.dot_dimension_numbers<[1], [0], [0], [1], [0, 0, 1, 1], [], []>} : vector<8x256xbf16>, vector<256x256xbf16>, vector<8x256xf32> -> vector<8x256xf32>
    %c0_11 = arith.constant 0 : index
    %c0_12 = arith.constant 0 : index
    %33 = vector.load %arg5[%c0_11, %c0_12] : memref<1x256xf32, #tpu.memory_space<vmem>>, vector<1x256xf32>
    %34 = vector.broadcast %33 : vector<1x256xf32> to vector<8x256xf32>
    %35 = arith.addf %32, %34 : vector<8x256xf32>
    %cst_13 = arith.constant 0.000000e+00 : f32
    %36 = vector.broadcast %cst_13 : f32 to vector<8x256xf32>
    %37 = arith.maximumf %35, %36 : vector<8x256xf32>
    %38 = arith.truncf %37 : vector<8x256xf32> to vector<8x256xbf16>
    %c0_14 = arith.constant 0 : index
    %c0_15 = arith.constant 0 : index
    %39 = vector.load %arg6[%c0_14, %c0_15] : memref<256x128xbf16, #tpu.memory_space<vmem>>, vector<256x128xbf16>
    %cst_16 = arith.constant dense<0.000000e+00> : vector<8x128xf32>
    %40 = tpu.matmul %38, %39, %cst_16 {dimension_numbers = #tpu.dot_dimension_numbers<[1], [0], [0], [1], [0, 0, 1, 1], [], []>} : vector<8x256xbf16>, vector<256x128xbf16>, vector<8x128xf32> -> vector<8x128xf32>
    %c0_17 = arith.constant 0 : index
    %c0_18 = arith.constant 0 : index
    %41 = vector.load %arg7[%c0_17, %c0_18] : memref<1x128xf32, #tpu.memory_space<vmem>>, vector<1x128xf32>
    %42 = vector.broadcast %41 : vector<1x128xf32> to vector<8x128xf32>
    %43 = arith.addf %40, %42 : vector<8x128xf32>
    %c0_19 = arith.constant 0 : index
    %c0_20 = arith.constant 0 : index
    %44 = vector.load %arg8[%c0_19, %c0_20] : memref<8x128xf32, #tpu.memory_space<vmem>>, vector<8x128xf32>
    tpu.vector_store %arg8[%c0_19, %c0_20], %43 {strides = array<i32>} : memref<8x128xf32, #tpu.memory_space<vmem>>, vector<8x128xf32>,
    return
  }
  func.func @transform_0(%arg0: i32) -> (i32, i32) {
    %c0_i32 = arith.constant 0 : i32
    %c0_i32_0 = arith.constant 0 : i32
    return %arg0, %c0_i32 : i32, i32
  }
  func.func @transform_1(%arg0: i32) -> (i32, i32) {
    %c0_i32 = arith.constant 0 : i32
    %c0_i32_0 = arith.constant 0 : i32
    %c0_i32_1 = arith.constant 0 : i32
    return %c0_i32, %c0_i32_0 : i32, i32
  }
  func.func @transform_2(%arg0: i32) -> (i32, i32) {
    %c0_i32 = arith.constant 0 : i32
    %c0_i32_0 = arith.constant 0 : i32
    %c0_i32_1 = arith.constant 0 : i32
    return %c0_i32, %c0_i32_0 : i32, i32
  }
  func.func @transform_3(%arg0: i32) -> (i32, i32) {
    %c0_i32 = arith.constant 0 : i32
    %c0_i32_0 = arith.constant 0 : i32
    %c0_i32_1 = arith.constant 0 : i32
    return %c0_i32, %c0_i32_0 : i32, i32
  }
  func.func @transform_4(%arg0: i32) -> (i32, i32) {
    %c0_i32 = arith.constant 0 : i32
    %c0_i32_0 = arith.constant 0 : i32
    %c0_i32_1 = arith.constant 0 : i32
    return %c0_i32, %c0_i32_0 : i32, i32
  }
  func.func @transform_5(%arg0: i32) -> (i32, i32) {
    %c0_i32 = arith.constant 0 : i32
    %c0_i32_0 = arith.constant 0 : i32
    %c0_i32_1 = arith.constant 0 : i32
    return %c0_i32, %c0_i32_0 : i32, i32
  }
  func.func @transform_6(%arg0: i32) -> (i32, i32) {
    %c0_i32 = arith.constant 0 : i32
    %c0_i32_0 = arith.constant 0 : i32
    %c0_i32_1 = arith.constant 0 : i32
    return %c0_i32, %c0_i32_0 : i32, i32
  }
  func.func @transform_7(%arg0: i32) -> (i32, i32) {
    %c0_i32 = arith.constant 0 : i32
    %c0_i32_0 = arith.constant 0 : i32
    return %arg0, %c0_i32 : i32, i32
  }
}

</mosaic_0001>

<bundles_post_ra>
// kernel: tpu_custom_call.1
= control target key start
LH: loop header
LB: loop body
LE: loop exit
PB: predicated region body
PF: predicated region fallthrough
CT: control target
= control target key end

     0   :  { %12 = vsyncpa [#allocation3], 0  ;;  %s983_s0 = inlined_call_operand.vmem [shape: f32[8,4], index: 0, kind: input, shape index: {}]   ;;  %s984_s1 = inlined_call_operand.vmem [shape: f32[4,256], index: 1, kind: input, shape index: {}]   ;;  %s985_s2 = inlined_call_operand.vmem [shape: f32[1,256], index: 2, kind: input, shape index: {}]   ;;  %s986_s3 = inlined_call_operand.hbm [shape: bf16[256,256], index: 3, kind: input, shape index: {}]   ;;  %s987_s4 = inlined_call_operand.vmem [shape: f32[1,256], index: 4, kind: input, shape index: {}]   ;;  %s988_s5 = inlined_call_operand.hbm [shape: bf16[256,128], index: 5, kind: input, shape index: {}]   ;;  %s989_s6 = inlined_call_operand.vmem [shape: f32[1,128], index: 6, kind: input, shape index: {}]   ;;  %s990_s7 = inlined_call_operand.hbm [shape: f32[8,128], index: 7, kind: output, shape index: {}]  }
   0x1   :  { %13 = vsyncpa [#allocation6], 0 }
   0x2   :  { %14 = vsyncpa [#allocation4], 0  ;;  %s25_s26 = sshll.u32 %s986_s3, 4  ;;  %s899_s27 = smov [#allocation2]   ;;  %s26_s26 = int_to_ptr.hbm [resolvable:$true] %s25_s26 }
   0x3   :  { %s27_s28 = sshll.u32 %s899_s27, 4  ;;  %s40_s8 = sshll.u32 %s988_s5, 4  ;;  %s28_s28 = int_to_ptr.vmem [resolvable:$true] %s27_s28  ;;  %s41_s8 = int_to_ptr.hbm [resolvable:$true] %s40_s8 }
   0x4   :  { %s900_s9 = smov 128   ;;  %s901_s10 = smov 8  }
   0x5   :  { %33 = dma.hbm_to_vmem [thread:$0]  %s26_s26, 4096, %s28_s28, [#allocation3], %s900_s9, %s900_s9, %s901_s10  }
   0x6   :  { %s902_s11 = smov [#allocation5]   ;;  %s903_s13 = smov 64  }
   0x7   :  { %s42_s12 = sshll.u32 %s902_s11, 4  ;;  %s904_s14 = smov 4   ;;  %s43_s12 = int_to_ptr.vmem [resolvable:$true] %s42_s12 }
   0x8   :  { %48 = dma.hbm_to_vmem [thread:$0]  %s41_s8, 2048, %s43_s12, [#allocation6], %s903_s13, %s903_s13, %s904_s14  }
   0x9   :  { %893 = dma.done.wait [#allocation3], 4096  }
   0xa   :  { %894 = vsyncadd [#allocation3], 4294963200 }
   0xb   :  { %895 = dma.done.wait [#allocation6], 2048  }
   0xc   :  { %896 = vsyncadd [#allocation6], 4294965248  ;;  %v905_v0 = vmov 0   ;;  %v906_v1 = vmov 2   ;;  %v59_v2 = vld [vmem:[%s983_s0] sm:$0xff]  ;;  %v907_v37 = vmov 1  }
   0xd   :  { %815 = vset.pattern.permute.xlu0 %v905_v0  ;;  %817 = vset.pattern.permute.xlu1 %v906_v1  ;;  %v622_v3 = vld [vmem:[#allocation2 + $0x70] sm:$0xf]  ;;  %v771_v4 = vld [vmem:[#allocation2 + $0x74] sm:$0xf0]  ;;  %v770_v8 = vld [vmem:[#allocation2 + $0x74] sm:$0xf] }
   0xe   :  { %69 = vperm.xlu0 %815, %v59_v2   ;;  %99 = vperm.xlu1 %817, %v59_v2   ;;  %v623_v5 = vor.u32 %v771_v4, %v622_v3  ;;  %v686_v6 = vld [vmem:[#allocation2 + $0xf0] sm:$0xf]  ;;  %v787_v7 = vld [vmem:[#allocation2 + $0xf4] sm:$0xf0]  ;;  %v624_v10 = vld [vmem:[#allocation2 + $0x78] sm:$0xf0] }
   0xf   :  { %v687_v9 = vor.u32 %v787_v7, %v686_v6  ;;  %v786_v11 = vld [vmem:[#allocation2 + $0xf4] sm:$0xf]  ;;  %v688_v12 = vld [vmem:[#allocation2 + $0xf8] sm:$0xf0]  ;;  %v627_v13 = vor.u32 %v770_v8, %v624_v10  ;;  %v614_v15 = vld [vmem:[#allocation2 + $0x60] sm:$0xf] }
  0x10   :  { %328 = vmatpush.bf16.msra.mxu0 %v623_v5  ;;  %v691_v14 = vor.u32 %v786_v11, %v688_v12  ;;  %v769_v16 = vld [vmem:[#allocation2 + $0x64] sm:$0xf0]  ;;  %v678_v17 = vld [vmem:[#allocation2 + $0xe0] sm:$0xf]  ;;  %v768_v20 = vld [vmem:[#allocation2 + $0x64] sm:$0xf] }
  0x11   :  { %341 = vmatpush.bf16.msra.mxu1 %v687_v9  ;;  %v615_v18 = vor.u32 %v769_v16, %v614_v15  ;;  %v785_v19 = vld [vmem:[#allocation2 + $0xe4] sm:$0xf0]  ;;  %v616_v21 = vld [vmem:[#allocation2 + $0x68] sm:$0xf0]  ;;  %354 = vmatpush.bf16.msra.mxu2 %v627_v13  ;;  %v784_v23 = vld [vmem:[#allocation2 + $0xe4] sm:$0xf] }
  0x12   :  { %367 = vmatpush.bf16.msra.mxu3 %v691_v14  ;;  %v679_v22 = vor.u32 %v785_v19, %v678_v17  ;;  %v680_v24 = vld [vmem:[#allocation2 + $0xe8] sm:$0xf0]  ;;  %v606_v25 = vld [vmem:[#allocation2 + $0x50] sm:$0xf]  ;;  %v767_v26 = vld [vmem:[#allocation2 + $0x54] sm:$0xf0]  ;;  %v619_v29 = vor.u32 %v768_v20, %v616_v21 }
  0x13   :  { %v670_v27 = vld [vmem:[#allocation2 + $0xd0] sm:$0xf]  ;;  %v783_v28 = vld [vmem:[#allocation2 + $0xd4] sm:$0xf0]  ;;  %v683_v30 = vor.u32 %v784_v23, %v680_v24  ;;  %v766_v31 = vld [vmem:[#allocation2 + $0x54] sm:$0xf]  ;;  %v607_v33 = vor.u32 %v767_v26, %v606_v25 }
  0x14   :  { %329 = vmatpush.bf16.msra.mxu0 %v615_v18  ;;  %v608_v32 = vld [vmem:[#allocation2 + $0x58] sm:$0xf0]  ;;  %v671_v34 = vor.u32 %v783_v28, %v670_v27  ;;  %v782_v35 = vld [vmem:[#allocation2 + $0xd4] sm:$0xf]  ;;  %v908_v38 = vmov 3   ;;  %s909_s25 = smov [#allocation7]  }
  0x15   :  { %342 = vmatpush.bf16.msra.mxu1 %v679_v22  ;;  %v672_v36 = vld [vmem:[#allocation2 + $0xd8] sm:$0xf0]  ;;  %355 = vmatpush.bf16.msra.mxu2 %v619_v29  ;;  %v611_v39 = vor.u32 %v766_v31, %v608_v32  ;;  %v598_v41 = vld [vmem:[#allocation2 + $0x40] sm:$0xf]  ;;  %v765_v42 = vld [vmem:[#allocation2 + $0x44] sm:$0xf0] }
  0x16   :  { %816 = vset.pattern.permute.xlu0 %v907_v37  ;;  %818 = vset.pattern.permute.xlu1 %v908_v38  ;;  %v675_v40 = vor.u32 %v782_v35, %v672_v36  ;;  %v662_v43 = vld [vmem:[#allocation2 + $0xc0] sm:$0xf]  ;;  %v599_v44 = vor.u32 %v765_v42, %v598_v41  ;;  %v781_v45 = vld [vmem:[#allocation2 + $0xc4] sm:$0xf0]  ;;  %v764_v46 = vld [vmem:[#allocation2 + $0x44] sm:$0xf] }
  0x17   :  { %84 = vperm.xlu0 %816, %v59_v2   ;;  %114 = vperm.xlu1 %818, %v59_v2   ;;  %v600_v47 = vld [vmem:[#allocation2 + $0x48] sm:$0xf0]  ;;  %v663_v48 = vor.u32 %v781_v45, %v662_v43  ;;  %v780_v50 = vld [vmem:[#allocation2 + $0xc4] sm:$0xf]  ;;  %v590_v53 = vld [vmem:[#allocation2 + $0x30] sm:$0xf] }
  0x18   :  { %368 = vmatpush.bf16.msra.mxu3 %v683_v30  ;;  %330 = vmatpush.bf16.msra.mxu0 %v607_v33  ;;  %v603_v49 = vor.u32 %v764_v46, %v600_v47  ;;  %v664_v51 = vld [vmem:[#allocation2 + $0xc8] sm:$0xf0]  ;;  %v763_v54 = vld [vmem:[#allocation2 + $0x34] sm:$0xf0]  ;;  %v654_v55 = vld [vmem:[#allocation2 + $0xb0] sm:$0xf] }
  0x19   :  { %343 = vmatpush.bf16.msra.mxu1 %v671_v34  ;;  %356 = vmatpush.bf16.msra.mxu2 %v611_v39  ;;  %v667_v52 = vor.u32 %v780_v50, %v664_v51  ;;  %v591_v56 = vor.u32 %v763_v54, %v590_v53  ;;  %v779_v57 = vld [vmem:[#allocation2 + $0xb4] sm:$0xf0]  ;;  %v762_v58 = vld [vmem:[#allocation2 + $0x34] sm:$0xf]  ;;  %v592_v59 = vld [vmem:[#allocation2 + $0x38] sm:$0xf0] }
  0x1a   :  { %v655_v60 = vor.u32 %v779_v57, %v654_v55  ;;  %v595_v61 = vor.u32 %v762_v58, %v592_v59  ;;  %v778_v62 = vld [vmem:[#allocation2 + $0xb4] sm:$0xf]  ;;  %v656_v63 = vld [vmem:[#allocation2 + $0xb8] sm:$0xf0]  ;;  %v582_v1 = vld [vmem:[#allocation2 + $0x20] sm:$0xf] }
  0x1b   :  { %v659_v0 = vor.u32 %v778_v62, %v656_v63  ;;  %v761_v2 = vld [vmem:[#allocation2 + $0x24] sm:$0xf0]  ;;  %v646_v4 = vld [vmem:[#allocation2 + $0xa0] sm:$0xf]  ;;  %v760_v6 = vld [vmem:[#allocation2 + $0x24] sm:$0xf] }
  0x1c   :  { %369 = vmatpush.bf16.msra.mxu3 %v675_v40  ;;  %331 = vmatpush.bf16.msra.mxu0 %v599_v44  ;;  %v583_v3 = vor.u32 %v761_v2, %v582_v1  ;;  %v777_v5 = vld [vmem:[#allocation2 + $0xa4] sm:$0xf0]  ;;  %v584_v8 = vld [vmem:[#allocation2 + $0x28] sm:$0xf0]  ;;  %v776_v9 = vld [vmem:[#allocation2 + $0xa4] sm:$0xf] }
  0x1d   :  { %344 = vmatpush.bf16.msra.mxu1 %v663_v48  ;;  %357 = vmatpush.bf16.msra.mxu2 %v603_v49  ;;  %v647_v7 = vor.u32 %v777_v5, %v646_v4  ;;  %v648_v10 = vld [vmem:[#allocation2 + $0xa8] sm:$0xf0]  ;;  %v587_v11 = vor.u32 %v760_v6, %v584_v8  ;;  %v574_v13 = vld [vmem:[#allocation2 + $0x10] sm:$0xf]  ;;  %v759_v14 = vld [vmem:[#allocation2 + $0x14] sm:$0xf0] }
  0x1e   :  { %v651_v12 = vor.u32 %v776_v9, %v648_v10  ;;  %v575_v15 = vor.u32 %v759_v14, %v574_v13  ;;  %v638_v16 = vld [vmem:[#allocation2 + $0x90] sm:$0xf]  ;;  %v775_v17 = vld [vmem:[#allocation2 + $0x94] sm:$0xf0]  ;;  %v758_v18 = vld [vmem:[#allocation2 + $0x14] sm:$0xf] }
  0x1f   :  { %819 = vset.pattern.permute.xlu0 %v908_v38  ;;  %v639_v19 = vor.u32 %v775_v17, %v638_v16  ;;  %v576_v20 = vld [vmem:[#allocation2 + $0x18] sm:$0xf0]  ;;  %v774_v21 = vld [vmem:[#allocation2 + $0x94] sm:$0xf]  ;;  %v566_v25 = vld [vmem:[#allocation2] sm:$0xf] }
  0x20   :  { %370 = vmatpush.bf16.msra.mxu3 %v667_v52  ;;  %332 = vmatpush.bf16.msra.mxu0 %v591_v56  ;;  %v640_v22 = vld [vmem:[#allocation2 + $0x98] sm:$0xf0]  ;;  %v579_v23 = vor.u32 %v758_v18, %v576_v20  ;;  %v757_v26 = vld [vmem:[#allocation2 + $0x4] sm:$0xf0]  ;;  %v630_v27 = vld [vmem:[#allocation2 + $0x80] sm:$0xf] }
  0x21   :  { %345 = vmatpush.bf16.msra.mxu1 %v655_v60  ;;  %358 = vmatpush.bf16.msra.mxu2 %v595_v61  ;;  %v643_v24 = vor.u32 %v774_v21, %v640_v22  ;;  %v567_v28 = vor.u32 %v757_v26, %v566_v25  ;;  %v773_v29 = vld [vmem:[#allocation2 + $0x84] sm:$0xf0]  ;;  %v756_v30 = vld [vmem:[#allocation2 + $0x4] sm:$0xf]  ;;  %v568_v31 = vld [vmem:[#allocation2 + $0x8] sm:$0xf0] }
  0x22   :  { %v631_v32 = vor.u32 %v773_v29, %v630_v27  ;;  %v571_v33 = vor.u32 %v756_v30, %v568_v31  ;;  %v772_v34 = vld [vmem:[#allocation2 + $0x84] sm:$0xf]  ;;  %v632_v35 = vld [vmem:[#allocation2 + $0x88] sm:$0xf0]  ;;  %v795_v37 = vld [vmem:[#allocation5 + $0x38] sm:$0xff]  ;;  %s548_s26 = sshll.u32 %s909_s25, 4  ;;  %s549_s26 = int_to_ptr.vmem [resolvable:$true] %s548_s26 }
  0x23   :  { %v635_v36 = vor.u32 %v772_v34, %v632_v35  ;;  %v803_v38 = vld [vmem:[#allocation5 + $0x78] sm:$0xff]  ;;  %v794_v39 = vld [vmem:[#allocation5 + $0x30] sm:$0xff]  ;;  %v793_v41 = vld [vmem:[#allocation5 + $0x28] sm:$0xff]  ;;  %s550_s29 = sshll.u32 %s990_s7, 4  ;;  %s551_s29 = int_to_ptr.hbm [resolvable:$true] %s550_s29 }
  0x24   :  { %371 = vmatpush.bf16.msra.mxu3 %v659_v0  ;;  %333 = vmatpush.bf16.msra.mxu0 %v583_v3  ;;  %v802_v40 = vld [vmem:[#allocation5 + $0x70] sm:$0xff]  ;;  %v801_v42 = vld [vmem:[#allocation5 + $0x68] sm:$0xff]  ;;  %v66_v43 = vld [vmem:[%s984_s1] ss:$4 sm:$0x3] }
  0x25   :  { %346 = vmatpush.bf16.msra.mxu1 %v647_v7  ;;  %359 = vmatpush.bf16.msra.mxu2 %v587_v11  ;;  %v792_v46 = vld [vmem:[#allocation5 + $0x20] sm:$0xff]  ;;  %v73_v48 = vperm.slane %v66_v43, 0  ;;  %v74_v49 = vperm.slane %v66_v43, 1  ;;  %v791_v56 = vld [vmem:[#allocation5 + $0x18] sm:$0xff]  ;;  %v790_v3 = vld [vmem:[#allocation5 + $0x10] sm:$0xff] }
  0x26   :  { %v60_v47 = vld [vmem:[%s985_s2] sm:$0x3]  ;;  %v562_v52 = vld [vmem:[%s984_s1 + $0x2] ss:$4 sm:$0x3]  ;;  %v799_v22 = vld [vmem:[#allocation5 + $0x58] sm:$0xff] }
  0x27   :  { %v800_v50 = vld [vmem:[#allocation5 + $0x60] sm:$0xff]  ;;  %v62_v53 = vperm.slane %v60_v47, 0  ;;  %v63_v54 = vperm.slane %v60_v47, 1  ;;  %v103_v61 = vperm.slane %v562_v52, 0  ;;  %v104_v62 = vperm.slane %v562_v52, 1  ;;  %v797_v26 = vld [vmem:[#allocation5 + $0x48] sm:$0xff] }
  0x28   :  { %372 = vmatpush.bf16.msra.mxu3 %v651_v12  ;;  %334 = vmatpush.bf16.msra.mxu0 %v575_v15  ;;  %v561_v51 = vld [vmem:[%s984_s1 + $0x1] ss:$4 sm:$0x3]  ;;  %v563_v55 = vld [vmem:[%s984_s1 + $0x3] ss:$4 sm:$0x3] }
  0x29   :  { %347 = vmatpush.bf16.msra.mxu1 %v639_v19  ;;  %360 = vmatpush.bf16.msra.mxu2 %v579_v23  ;;  %v88_v59 = vperm.slane %v561_v51, 0  ;;  %v89_v60 = vperm.slane %v561_v51, 1  ;;  %v118_v63 = vperm.slane %v563_v55, 0  ;;  %v119_v0 = vperm.slane %v563_v55, 1  ;;  %v789_v23 = vld [vmem:[#allocation5 + $0x8] sm:$0xff]  ;;  %v788_v25 = vld [vmem:[#allocation5] sm:$0xff] }
  0x2a   :  { %v796_v27 = vld [vmem:[#allocation5 + $0x40] sm:$0xff] }
  0x2c   :  { %373 = vmatpush.bf16.msra.mxu3 %v643_v24  ;;  %335 = vmatpush.bf16.msra.mxu0 %v567_v28  ;;  %v798_v24 = vld [vmem:[#allocation5 + $0x50] sm:$0xff]  ;;  %v162_v28 = vld [vmem:[%s987_s4] sm:$0x3] }
  0x2d   :  { %348 = vmatpush.bf16.msra.mxu1 %v631_v32  ;;  %361 = vmatpush.bf16.msra.mxu2 %v571_v33  ;;  %v164_v29 = vperm.slane %v162_v28, 0  ;;  %v165_v34 = vperm.slane %v162_v28, 1 }
  0x30   :  { %374 = vmatpush.bf16.msra.mxu3 %v635_v36  ;;  %516 = vmatpush.bf16.msrb.mxu0 %v795_v37 }
  0x31   :  { %529 = vmatpush.bf16.msrb.mxu1 %v803_v38 }
  0x34   :  { %517 = vmatpush.bf16.msrb.mxu0 %v794_v39 }
  0x35   :  { %530 = vmatpush.bf16.msrb.mxu1 %v802_v40 }
  0x38   :  { %518 = vmatpush.bf16.msrb.mxu0 %v793_v41 }
  0x39   :  { %531 = vmatpush.bf16.msrb.mxu1 %v801_v42 }
  0x3c   :  { %519 = vmatpush.bf16.msrb.mxu0 %v792_v46 }
  0x3d   :  { %532 = vmatpush.bf16.msrb.mxu1 %v800_v50 }
  0x40   :  { %520 = vmatpush.bf16.msrb.mxu0 %v791_v56 }
  0x41   :  { %533 = vmatpush.bf16.msrb.mxu1 %v799_v22 }
  0x44   :  { %521 = vmatpush.bf16.msrb.mxu0 %v790_v3 }
  0x45   :  { %534 = vmatpush.bf16.msrb.mxu1 %v798_v24 }
  0x48   :  { %522 = vmatpush.bf16.msrb.mxu0 %v789_v23 }
  0x49   :  { %535 = vmatpush.bf16.msrb.mxu1 %v797_v26 }
  0x4c   :  { %523 = vmatpush.bf16.msrb.mxu0 %v788_v25 }
  0x4d   :  { %536 = vmatpush.bf16.msrb.mxu1 %v796_v27 }
  0x80   :  { %v70_v44 = vpop.permute.xlu0 %69  ;;  %v100_v45 = vpop.permute.xlu1 %99 }
  0x81   :  { %v77_v57 = vmul.f32 %v73_v48, %v70_v44  ;;  %v78_v58 = vmul.f32 %v74_v49, %v70_v44  ;;  %v107_v8 = vmul.f32 %v103_v61, %v100_v45  ;;  %v108_v9 = vmul.f32 %v104_v62, %v100_v45  ;;  %v820_v48 = vld [vmem:[%s989_s6] ss:$0 sm:$0xff] }
  0x83   :  { %v79_v4 = vadd.f32 %v77_v57, %v62_v53  ;;  %v80_v5 = vadd.f32 %v78_v58, %v63_v54 }
  0x89   :  { %v85_v1 = vpop.permute.xlu0 %84  ;;  %v115_v2 = vpop.permute.xlu1 %114 }
  0x8a   :  { %v92_v6 = vmul.f32 %v88_v59, %v85_v1  ;;  %v93_v7 = vmul.f32 %v89_v60, %v85_v1  ;;  %v122_v12 = vmul.f32 %v118_v63, %v115_v2  ;;  %v123_v13 = vmul.f32 %v119_v0, %v115_v2 }
  0x8c   :  { %v94_v10 = vadd.f32 %v92_v6, %v79_v4  ;;  %v95_v11 = vadd.f32 %v93_v7, %v80_v5 }
  0x8e   :  { %v109_v14 = vadd.f32 %v107_v8, %v94_v10  ;;  %v110_v15 = vadd.f32 %v108_v9, %v95_v11 }
  0x90   :  { %v124_v16 = vadd.f32 %v122_v12, %v109_v14  ;;  %v125_v17 = vadd.f32 %v123_v13, %v110_v15 }
  0x92   :  { %v126_v18 = vmax.f32 %v124_v16, 0.0  ;;  %v127_v19 = vmax.f32 %v125_v17, 0.0 }
  0x94   :  { %v128_v20 = vpack.c.bf16 %v126_v18, %v126_v18  ;;  %v129_v21 = vpack.c.bf16 %v127_v19, %v127_v19 }
  0x96   :  { %336 = vmatmul.bf16.vlgmr.msra.gmra.mxu0 %v128_v20  ;;  %349 = vmatmul.bf16.vlgmr.msra.gmra.mxu1 %v129_v21 }
  0x97   :  { %362 = vmatmul.bf16.vlgmr.msra.gmra.mxu2 %v128_v20  ;;  %375 = vmatmul.bf16.vlgmr.msra.gmra.mxu3 %v129_v21 }
 0x113   :  { %v337_v30 = vpop.f32.mrf.mxu0  ;;  %v350_v31 = vpop.f32.mrf.mxu1 }
 0x114   :  { %v338_v32 = vadd.f32 %v337_v30, %v164_v29 }
 0x116   :  { %v351_v33 = vadd.f32 %v350_v31, %v338_v32 }
 0x118   :  { %v380_v35 = vmax.f32 %v351_v33, 0.0 }
 0x11a   :  { %v382_v36 = vpack.c.bf16 %v380_v35, %v380_v35  ;;  %v363_v37 = vpop.f32.mrf.mxu2  ;;  %v376_v38 = vpop.f32.mrf.mxu3 }
 0x11b   :  { %v364_v39 = vadd.f32 %v363_v37, %v165_v34  ;;  %v339_v40 = vpop.f32.mrf.mxu0  ;;  %v352_v41 = vpop.f32.mrf.mxu1 }
 0x11c   :  { %524 = vmatmul.bf16.vlgmr.msrb.gmra.mxu0 %v382_v36 }
 0x11d   :  { %v377_v42 = vadd.f32 %v376_v38, %v364_v39 }
 0x11f   :  { %v381_v43 = vmax.f32 %v377_v42, 0.0 }
 0x121   :  { %v383_v44 = vpack.c.bf16 %v381_v43, %v381_v43 }
 0x122   :  { %v365_v45 = vpop.f32.mrf.mxu2  ;;  %v378_v46 = vpop.f32.mrf.mxu3 }
 0x123   :  { %537 = vmatmul.bf16.vlgmr.msrb.gmra.mxu1 %v383_v44 }
 0x199   :  { %v525_v47 = vpop.f32.mrf.mxu0 }
 0x19a   :  { %v526_v49 = vadd.f32 %v820_v48, %v525_v47 }
 0x1a0   :  { %v538_v50 = vpop.f32.mrf.mxu1 }
 0x1a1   :  { %v539_v51 = vadd.f32 %v538_v50, %v526_v49  ;;  %v527_v52 = vpop.f32.mrf.mxu0 }
 0x1a3   :  { %542 = vst [vmem:[#allocation7] sm:$0xff] %v539_v51 }
 0x1a4   :  { %553 = dma.vmem_to_hbm [thread:$0]  %s549_s26, 128, %s551_s29, [#allocation4]  }
 0x1a8   :  { %v540_v53 = vpop.f32.mrf.mxu1 }
 0x1a9   :  { %897 = dma.done.wait [#allocation4], 128  }
 0x1aa   :  { %898 = vsyncadd [#allocation4], 4294967168 }
 0x1ab   :  { %558 = vsyncpa [#allocation3], 1 }
 0x1ac   :  { %559 = vsyncpa [#allocation6], 1 }
 0x1ad   :  { %560 = vsyncpa [#allocation4], 1 }

</bundles_post_ra>
